<compile_context>
chip_gen: v5e
topology: v5e:2x2
jax: 0.10.0
libtpu: 0.0.40
codegen_flags: <defaults>
</compile_context>

<pallas_src>
import jax
import jax.numpy as jnp
from jax.experimental import pallas as pl
from jax.experimental.pallas import tpu as pltpu

_LANE = 128
_SUBLANE = 8


def _round_up(x, m):
    return ((x + m - 1) // m) * m


def _vmem_limit_bytes():
    """~75% of physical VMEM (96 MiB v5e/v6e, 48 MiB v7x); safe fallback 48 MiB."""
    try:
        cap = pltpu.get_tpu_info().vmem_capacity_bytes
    except Exception:
        cap = 64 * 1024 * 1024  # conservative (v7x per-TC physical VMEM)
    return int(cap * 3 // 4)


def _choose_tiles(M, D, Np, sx, sc, so, budget, tm_cap=None, tn_cap=None):
    """Pick (tm, tn) from a VMEM byte budget.

    Budget model (double-buffered pipeline; bias is negligible):
        2*tm*D*sx (input rows) + 2*D*tn*sc + 2*tn*4 (weight/bias cols)
      + 2*tm*tn*so (output rows)  <=  budget
    """
    # Column tile: keep the whole weight slab resident if it fits in half the
    # budget, otherwise stream lane-dense column tiles (VMEM flat in Np).
    per_col = 2 * D * sc + 2 * 4
    if Np * per_col <= budget // 2:
        tn = Np
    else:
        tn = max(_LANE, (budget // 2) // per_col // _LANE * _LANE)
    if tn_cap is not None:
        tn = min(tn, max(_LANE, tn_cap // _LANE * _LANE))
    tn = min(tn, Np)
    nn = pl.cdiv(Np, tn)
    tn = min(tn, _round_up(pl.cdiv(Np, nn), _LANE))      # balance column tiles

    # Row tile: as big as the remaining budget allows (amortizes per-grid-step
    # overhead, deepens DMA/MXU overlap), capped at 2048, 256-aligned if large.
    rem = max(budget - tn * per_col, 0)
    per_row = 2 * D * sx + 2 * tn * so
    tm = max(_SUBLANE, rem // per_row // _SUBLANE * _SUBLANE)
    tm = min(tm, 2048)
    if tm_cap is not None:
        tm = min(tm, max(_SUBLANE, tm_cap // _SUBLANE * _SUBLANE))
    if tm >= 256:
        tm = tm // 256 * 256
    nm = pl.cdiv(M, tm)
    tm = min(tm, _round_up(pl.cdiv(M, nm), _SUBLANE))    # balance row tiles
    return tm, tn


def _fused_proj_kernel(x_ref, w_ref, b_ref, o_ref):
    # x_ref: (tm, D) input dtype | w_ref: (D, tn) compute dtype
    # b_ref: (1, tn) f32         | o_ref: (tm, tn) output dtype
    x = x_ref[...].astype(w_ref.dtype)  # in-kernel cast: VPU slot, co-issues w/ MXU
    acc = jnp.dot(x, w_ref[...], preferred_element_type=jnp.float32)
    o_ref[...] = (acc + b_ref[...]).astype(o_ref.dtype)


def _fused_projection(x2d, w_all, b_all, out_dtype, tm_cap=None, tn_cap=None):
    """(M, D) @ (D, Np) + (1, Np) -> (M, Np), tiled over a 2-D (rows, cols) grid."""
    M, D = x2d.shape
    Np = w_all.shape[1]
    so = jnp.dtype(out_dtype).itemsize
    vmem_limit = _vmem_limit_bytes()
    budget = int(vmem_limit * 0.85)  # headroom for Mosaic internal scratch
    tm, tn = _choose_tiles(M, D, Np, x2d.dtype.itemsize, w_all.dtype.itemsize,
                           so, budget, tm_cap=tm_cap, tn_cap=tn_cap)
    grid = (pl.cdiv(M, tm), pl.cdiv(Np, tn))

    cost = pl.CostEstimate(
        flops=2 * M * D * Np,
        transcendentals=0,
        bytes_accessed=(M * D * x2d.dtype.itemsize
                        + D * Np * w_all.dtype.itemsize
                        + Np * 4
                        + M * Np * so),
    )

    return pl.pallas_call(
        _fused_proj_kernel,
        out_shape=jax.ShapeDtypeStruct((M, Np), out_dtype),
        grid=grid,
        in_specs=[
            pl.BlockSpec((tm, D), lambda i, j: (i, 0)),   # streamed row tiles
            pl.BlockSpec((D, tn), lambda i, j: (0, j)),   # weight column tiles
            pl.BlockSpec((1, tn), lambda i, j: (0, j)),   # bias column tiles
        ],
        out_specs=pl.BlockSpec((tm, tn), lambda i, j: (i, j)),
        compiler_params=pltpu.CompilerParams(
            dimension_semantics=("parallel", "parallel"),  # megacore-friendly
            vmem_limit_bytes=vmem_limit,
        ),
        cost_estimate=cost,
    )(x2d, w_all, b_all)


def _build_forward(mode_info, n_padded, tm_cap, tn_cap):
    """mode_info: tuple of (mode, seq_off, seq_len, col_off, out_dim)."""

    def fwd(x, w_all, b_all):
        B, S, D = x.shape
        x2d = x.reshape(B * S, D)  # contiguous reshape: no copy, no cast
        y = _fused_projection(x2d, w_all, b_all, out_dtype=x.dtype,
                              tm_cap=tm_cap, tn_cap=tn_cap)
        y = y.reshape(B, S, n_padded)
        return {mode: y[:, so_:so_ + L, co:co + N]
                for mode, so_, L, co, N in mode_info}

    return jax.jit(fwd)


class MultimodalPostprocessor:
    """JAX/Pallas port of the multimodal (projection) postprocessor.

    in_shapes: {mode: (seq_len_m, D)}  (D must be uniform across modes)
    out_dims:  {mode: out_dim_m}       (per-mode projection output width)
    """

    def __init__(self, in_shapes: dict, out_dims: dict, key,
                 compute_dtype=jnp.float32, tm_cap=None, tn_cap=None):
        latent_dims = {shape[-1] for shape in in_shapes.values()}
        assert len(latent_dims) == 1, (
            f"in_shape[-1] must be uniform, got {in_shapes}")
        D = next(iter(latent_dims))
        self.in_shapes = in_shapes
        self.split_sizes = [shape[0] for shape in in_shapes.values()]
        self.total_seq_len = sum(self.split_sizes)
        self.latent_dim = D
        self.compute_dtype = compute_dtype

        # Lane-aligned per-mode column offsets => wrapper slices start on a
        # 128-lane boundary (no masked-copy HBM pass per mode).  Fall back to
        # dense packing if alignment would more than double the column count.
        dense_total = sum(out_dims[m] for m in in_shapes)
        aligned_total = sum(_round_up(out_dims[m], _LANE) for m in in_shapes)
        lane_align = aligned_total <= 2 * _round_up(dense_total, _LANE)

        self.params = {}
        mode_info = []
        seq_off, col_off = 0, 0
        bound = 1.0 / (D ** 0.5)  # mimics nn.Linear uniform init
        for mode, in_shape in in_shapes.items():
            out_dim = out_dims[mode]
            key, kw, kb = jax.random.split(key, 3)
            w = jax.random.uniform(kw, (D, out_dim), jnp.float32, -bound, bound)
            b = jax.random.uniform(kb, (1, out_dim), jnp.float32, -bound, bound)
            self.params[mode] = (w, b)
            mode_info.append((mode, seq_off, in_shape[0], col_off, out_dim))
            seq_off += in_shape[0]
            col_off += _round_up(out_dim, _LANE) if lane_align else out_dim
        n_padded = _round_up(col_off, _LANE)

        # Fused lane-dense parameter slabs (D, Np) / (1, Np), Np % 128 == 0.
        w_all = jnp.zeros((D, n_padded), jnp.float32)
        b_all = jnp.zeros((1, n_padded), jnp.float32)
        for mode, _, _, coff, n in mode_info:
            w, b = self.params[mode]
            w_all = w_all.at[:, coff:coff + n].set(w)
            b_all = b_all.at[:, coff:coff + n].set(b)
        self.w_all = w_all.astype(compute_dtype)  # bf16 weights opt-in
        self.b_all = b_all                        # bias stays f32 (added in f32)

        self.out_shapes = {m: (in_shapes[m][0], out_dims[m]) for m in in_shapes}
        self._forward = _build_forward(tuple(mode_info), n_padded, tm_cap, tn_cap)

    def __call__(self, x):
        assert x.shape[1] == self.total_seq_len, (
            f"input shape[1]: {x.shape[1]} != {self.total_seq_len}")
        assert x.shape[-1] == self.latent_dim, (
            f"input shape[-1]: {x.shape[-1]} != latent dim {self.latent_dim}")
        return self._forward(x, self.w_all, self.b_all)


if __name__ == "__main__":
    key = jax.random.PRNGKey(0)
    k1, k2, kx = jax.random.split(key, 3)

    # Two modes sharing latent dim D=32.
    in_shapes = {"image": (12, 32), "text": (8, 32)}   # (seq_len_m, D)
    out_dims = {"image": 16, "text": 8}
    B = 2 + 1                                          # B*S = 60 rows
    S = sum(s[0] for s in in_shapes.values())          # 20
    x = jax.random.normal(kx, (B, S, 32), jnp.float32)

    def check(model):
        outs = model(x)
        jax.block_until_ready(outs)
        off = 0
        for mode, (L, _) in model.in_shapes.items():
            chunk = x[:, off:off + L, :]
            off += L
            w, b = model.params[mode]
            ref = chunk @ w + b[0]
            assert outs[mode].shape == (B, L, out_dims[mode]), (
                mode, outs[mode].shape)
            assert jnp.allclose(outs[mode], ref, atol=1e-5, rtol=1e-5), mode

    # 1) Default path: single row tile, resident weight slab.
    check(MultimodalPostprocessor(in_shapes, out_dims, k1))
    # 2) Forced multi-tile path: 4 row tiles (partial 12-row tail) x 2 column
    #    tiles — exercises boundary masking and lane-aligned per-mode slices.
    check(MultimodalPostprocessor(in_shapes, out_dims, k2, tm_cap=16, tn_cap=128))

    print("KERNEL_OK")
</pallas_src>

<mosaic_0001>
module attributes {stable_mosaic.version = 11 : i64} {
  func.func @_fused_proj_kernel(%arg0: i32, %arg1: i32, %arg2: memref<64x32xf32, #tpu.memory_space<vmem>>, %arg3: memref<32x256xf32, #tpu.memory_space<vmem>>, %arg4: memref<1x256xf32, #tpu.memory_space<vmem>>, %arg5: memref<64x256xf32, #tpu.memory_space<vmem>>) attributes {dimension_semantics = [#tpu.dimension_semantics<parallel>, #tpu.dimension_semantics<parallel>], iteration_bounds = array<i64: 1, 1>, scalar_prefetch = 0 : i64, scratch_operands = 0 : i64, tpu.core_type = #tpu.core_type<tc>, window_params = [{transform_indices = @transform_0, window_bounds = array<i64: 64, 32>}, {transform_indices = @transform_1, window_bounds = array<i64: 32, 256>}, {transform_indices = @transform_2, window_bounds = array<i64: 1, 256>}, {transform_indices = @transform_3, window_bounds = array<i64: 64, 256>}]} {
    %c0 = arith.constant 0 : index
    %c0_0 = arith.constant 0 : index
    %0 = vector.load %arg2[%c0, %c0_0] : memref<64x32xf32, #tpu.memory_space<vmem>>, vector<64x32xf32>
    %c0_1 = arith.constant 0 : index
    %c0_2 = arith.constant 0 : index
    %1 = vector.load %arg3[%c0_1, %c0_2] : memref<32x256xf32, #tpu.memory_space<vmem>>, vector<32x256xf32>
    %cst = arith.constant dense<0.000000e+00> : vector<64x256xf32>
    %2 = tpu.matmul %0, %1, %cst {dimension_numbers = #tpu.dot_dimension_numbers<[1], [0], [0], [1], [0, 0, 1, 1], [], []>} : vector<64x32xf32>, vector<32x256xf32>, vector<64x256xf32> -> vector<64x256xf32>
    %c0_3 = arith.constant 0 : index
    %c0_4 = arith.constant 0 : index
    %3 = vector.load %arg4[%c0_3, %c0_4] : memref<1x256xf32, #tpu.memory_space<vmem>>, vector<1x256xf32>
    %4 = vector.broadcast %3 : vector<1x256xf32> to vector<64x256xf32>
    %5 = arith.addf %2, %4 : vector<64x256xf32>
    %c0_5 = arith.constant 0 : index
    %c0_6 = arith.constant 0 : index
    %6 = vector.load %arg5[%c0_5, %c0_6] : memref<64x256xf32, #tpu.memory_space<vmem>>, vector<64x256xf32>
    tpu.vector_store %arg5[%c0_5, %c0_6], %5 {strides = array<i32>} : memref<64x256xf32, #tpu.memory_space<vmem>>, vector<64x256xf32>,
    return
  }
  func.func @transform_0(%arg0: i32, %arg1: i32) -> (i32, i32) {
    %c0_i32 = arith.constant 0 : i32
    %c0_i32_0 = arith.constant 0 : i32
    return %arg0, %c0_i32 : i32, i32
  }
  func.func @transform_1(%arg0: i32, %arg1: i32) -> (i32, i32) {
    %c0_i32 = arith.constant 0 : i32
    %c0_i32_0 = arith.constant 0 : i32
    return %c0_i32, %arg1 : i32, i32
  }
  func.func @transform_2(%arg0: i32, %arg1: i32) -> (i32, i32) {
    %c0_i32 = arith.constant 0 : i32
    %c0_i32_0 = arith.constant 0 : i32
    return %c0_i32, %arg1 : i32, i32
  }
  func.func @transform_3(%arg0: i32, %arg1: i32) -> (i32, i32) {
    %c0_i32 = arith.constant 0 : i32
    return %arg0, %arg1 : i32, i32
  }
}

</mosaic_0001>

<bundles_post_ra>
// kernel: fwd.1
= control target key start
LH: loop header
LB: loop body
LE: loop exit
PB: predicated region body
PF: predicated region fallthrough
CT: control target
= control target key end

     0   :  { %vm36_vm0 = vcmask 261120   ;;  %s322_s1 = inlined_call_operand.vmem [shape: f32[32,256], index: 1, kind: input, shape index: {}]   ;;  %s323_s0 = inlined_call_operand.vmem [shape: f32[60,32], index: 0, kind: input, shape index: {}]   ;;  %s324_s2 = inlined_call_operand.vmem [shape: f32[1,256], index: 2, kind: input, shape index: {}]   ;;  %s325_s3 = inlined_call_operand.vmem [shape: f32[60,256], index: 3, kind: output, shape index: {}]  }
   0x1   :  { %v28_v0 = vld [vmem:[%s322_s1 + $0x30] sm:$0xff]  ;;  %v29_v1 = vld [vmem:[%s322_s1 + $0x38] sm:$0xff]  ;;  %v26_v2 = vld [vmem:[%s322_s1 + $0x20] sm:$0xff] }
   0x2   :  { %179 = vmatpush.msra.mxu2 %v28_v0  ;;  %183 = vmatpush.msra.mxu3 %v29_v1  ;;  %v27_v3 = vld [vmem:[%s322_s1 + $0x28] sm:$0xff]  ;;  %v24_v4 = vld [vmem:[%s322_s1 + $0x10] sm:$0xff]  ;;  %v25_v5 = vld [vmem:[%s322_s1 + $0x18] sm:$0xff] }
   0x3   :  { %73 = vmatpush.msra.mxu0 %v28_v0  ;;  %114 = vmatpush.msra.mxu1 %v29_v1  ;;  %v22_v6 = vld [vmem:[%s322_s1] sm:$0xff]  ;;  %v23_v7 = vld [vmem:[%s322_s1 + $0x8] sm:$0xff]  ;;  %v20_v12 = vld [vmem:[%s323_s0 + $0x30] sm:$0xff] }
   0x4   :  { %180 = vmatpush.msra.mxu2 %v26_v2  ;;  %184 = vmatpush.msra.mxu3 %v27_v3  ;;  %v18_v8 = vld [vmem:[%s323_s0 + $0x20] sm:$0xff]  ;;  %v19_v10 = vld [vmem:[%s323_s0 + $0x28] sm:$0xff]  ;;  %v16_v13 = vld [vmem:[%s323_s0 + $0x10] sm:$0xff] }
   0x5   :  { %74 = vmatpush.msra.mxu0 %v26_v2  ;;  %115 = vmatpush.msra.mxu1 %v27_v3  ;;  %v14_v9 = vld [vmem:[%s323_s0] sm:$0xff]  ;;  %v15_v11 = vld [vmem:[%s323_s0 + $0x8] sm:$0xff]  ;;  %v21_v14 = vld [vmem:[%s323_s0 + $0x38] sm:$0xff] }
   0x6   :  { %181 = vmatpush.msra.mxu2 %v24_v4  ;;  %185 = vmatpush.msra.mxu3 %v25_v5  ;;  %v17_v15 = vld [vmem:[%s323_s0 + $0x18] sm:$0xff]  ;;  %v30_v16 = vld [vmem:[%s324_s2] sm:$0x3] }
   0x7   :  { %75 = vmatpush.msra.mxu0 %v24_v4  ;;  %116 = vmatpush.msra.mxu1 %v25_v5  ;;  %v32_v17 = vperm.slane %v30_v16, 0  ;;  %v33_v18 = vperm.slane %v30_v16, 1 }
   0x8   :  { %182 = vmatpush.msra.mxu2 %v22_v6  ;;  %186 = vmatpush.msra.mxu3 %v23_v7 }
   0x9   :  { %167 = vmatmul.msk.f32.vlgmr.msra.gmra.mxu2 %vm36_vm0, %v18_v8  ;;  %175 = vmatmul.msk.f32.vlgmr.msra.gmra.mxu3 %vm36_vm0, %v18_v8 }
   0xa   :  { %76 = vmatpush.msra.mxu0 %v22_v6  ;;  %117 = vmatpush.msra.mxu1 %v23_v7 }
   0xb   :  { %163 = vmatmul.msk.f32.vlgmr.msra.gmra.mxu0 %vm36_vm0, %v14_v9  ;;  %171 = vmatmul.msk.f32.vlgmr.msra.gmra.mxu1 %vm36_vm0, %v14_v9 }
  0x11   :  { %168 = vmatmul.msk.f32.gmra.mxu2 %vm36_vm0, %v19_v10  ;;  %176 = vmatmul.msk.f32.gmra.mxu3 %vm36_vm0, %v19_v10 }
  0x13   :  { %164 = vmatmul.msk.f32.gmra.mxu0 %vm36_vm0, %v15_v11  ;;  %172 = vmatmul.msk.f32.gmra.mxu1 %vm36_vm0, %v15_v11 }
  0x19   :  { %169 = vmatmul.msk.f32.gmra.mxu2 %vm36_vm0, %v20_v12  ;;  %177 = vmatmul.msk.f32.gmra.mxu3 %vm36_vm0, %v20_v12 }
  0x1b   :  { %165 = vmatmul.msk.f32.gmra.mxu0 %vm36_vm0, %v16_v13  ;;  %173 = vmatmul.msk.f32.gmra.mxu1 %vm36_vm0, %v16_v13 }
  0x21   :  { %170 = vmatmul.msk.f32.gmra.mxu2 %vm36_vm0, %v21_v14  ;;  %178 = vmatmul.msk.f32.gmra.mxu3 %vm36_vm0, %v21_v14 }
  0x23   :  { %166 = vmatmul.msk.f32.gmra.mxu0 %vm36_vm0, %v17_v15  ;;  %174 = vmatmul.msk.f32.gmra.mxu1 %vm36_vm0, %v17_v15 }
  0x88   :  { %v78_v19 = vpop.f32.mrf.mxu0  ;;  %v119_v20 = vpop.f32.mrf.mxu1 }
  0x89   :  { %v79_v21 = vadd.f32 %v78_v19, %v32_v17  ;;  %v120_v22 = vadd.f32 %v119_v20, %v33_v18 }
  0x8b   :  { %143 = vst [vmem:[%s325_s3] sm:$0xff] %v79_v21 }
  0x8c   :  { %v90_v23 = vpop.f32.mrf.mxu2  ;;  %144 = vst [vmem:[%s325_s3 + $0x8] sm:$0xff] %v120_v22  ;;  %v131_v24 = vpop.f32.mrf.mxu3 }
  0x8d   :  { %v91_v25 = vadd.f32 %v90_v23, %v32_v17  ;;  %v132_v26 = vadd.f32 %v131_v24, %v33_v18 }
  0x8f   :  { %151 = vst [vmem:[%s325_s3 + $0x40] sm:$0xff] %v91_v25 }
  0x90   :  { %152 = vst [vmem:[%s325_s3 + $0x48] sm:$0xff] %v132_v26  ;;  %v81_v27 = vpop.f32.mrf.mxu0  ;;  %v122_v28 = vpop.f32.mrf.mxu1 }
  0x91   :  { %v82_v29 = vadd.f32 %v81_v27, %v32_v17  ;;  %v123_v30 = vadd.f32 %v122_v28, %v33_v18 }
  0x93   :  { %145 = vst [vmem:[%s325_s3 + $0x10] sm:$0xff] %v82_v29 }
  0x94   :  { %v93_v31 = vpop.f32.mrf.mxu2  ;;  %146 = vst [vmem:[%s325_s3 + $0x18] sm:$0xff] %v123_v30  ;;  %v134_v32 = vpop.f32.mrf.mxu3 }
  0x95   :  { %v94_v33 = vadd.f32 %v93_v31, %v32_v17  ;;  %v135_v34 = vadd.f32 %v134_v32, %v33_v18 }
  0x97   :  { %153 = vst [vmem:[%s325_s3 + $0x50] sm:$0xff] %v94_v33 }
  0x98   :  { %154 = vst [vmem:[%s325_s3 + $0x58] sm:$0xff] %v135_v34  ;;  %v84_v35 = vpop.f32.mrf.mxu0  ;;  %v125_v36 = vpop.f32.mrf.mxu1 }
  0x99   :  { %v85_v37 = vadd.f32 %v84_v35, %v32_v17  ;;  %v126_v38 = vadd.f32 %v125_v36, %v33_v18 }
  0x9b   :  { %147 = vst [vmem:[%s325_s3 + $0x20] sm:$0xff] %v85_v37 }
  0x9c   :  { %v96_v39 = vpop.f32.mrf.mxu2  ;;  %148 = vst [vmem:[%s325_s3 + $0x28] sm:$0xff] %v126_v38  ;;  %v137_v40 = vpop.f32.mrf.mxu3 }
  0x9d   :  { %v97_v41 = vadd.f32 %v96_v39, %v32_v17  ;;  %v138_v42 = vadd.f32 %v137_v40, %v33_v18 }
  0x9f   :  { %155 = vst [vmem:[%s325_s3 + $0x60] sm:$0xff] %v97_v41 }
  0xa0   :  { %156 = vst [vmem:[%s325_s3 + $0x68] sm:$0xff] %v138_v42  ;;  %v87_v43 = vpop.f32.mrf.mxu0  ;;  %v128_v44 = vpop.f32.mrf.mxu1 }
  0xa1   :  { %v88_v45 = vadd.f32 %v87_v43, %v32_v17  ;;  %v129_v46 = vadd.f32 %v128_v44, %v33_v18 }
  0xa3   :  { %149 = vst [vmem:[%s325_s3 + $0x30] sm:$0xff] %v88_v45 }
  0xa4   :  { %v99_v47 = vpop.f32.mrf.mxu2  ;;  %150 = vst [vmem:[%s325_s3 + $0x38] sm:$0xff] %v129_v46  ;;  %v140_v48 = vpop.f32.mrf.mxu3 }
  0xa5   :  { %v100_v49 = vadd.f32 %v99_v47, %v32_v17  ;;  %v141_v50 = vadd.f32 %v140_v48, %v33_v18 }
  0xa7   :  { %157 = vst [vmem:[%s325_s3 + $0x70] sm:$0xff] %v100_v49 }
  0xa8   :  { %158 = vst [vmem:[%s325_s3 + $0x78] sm:$0xff] %v141_v50 }

</bundles_post_ra>
